<compile_context>
chip_gen: v7x
topology: tpu7x:2x2x1
jax: 0.10.0
libtpu: 0.0.40
codegen_flags: <defaults>
</compile_context>

<pallas_src>
import functools

import jax
import jax.numpy as jnp
from jax import lax
from jax.experimental import pallas as pl
from jax.experimental.pallas import tpu as pltpu

EPS = 1e-5
LANE = 128


def _round_up(v, m):
    return (v + m - 1) // m * m


def _make_resblock_kernel(*, stride, l_out, inv_m, has_proj, compute_dtype):
    """Fused two-pass ResidualBlock kernel.

    Grid is (2, N): program_id(0) is the pass (0 = accumulate BN statistics,
    1 = normalize + shortcut + ReLU), program_id(1) is the batch sample.
    """

    def kernel(x_ref, w1_ref, *rest):
        if has_proj:
            wsc_ref, bn_ref, out_ref, stats_ref = rest
        else:
            bn_ref, out_ref, stats_ref = rest

        p = pl.program_id(0)
        b = pl.program_id(1)

        @pl.when(jnp.logical_and(p == 0, b == 0))
        def _init():
            stats_ref[...] = jnp.zeros_like(stats_ref)

        # ---- fused "im2col": three shifted row windows of the padded sample.
        # TODO(synk): for very long L, tile the sequence axis with a 1-row halo
        # instead of loading the whole per-sample sequence.
        if stride == 1:
            x_full = x_ref[0]                               # (L+2, C_in_p)
            taps = [x_full[k:k + l_out] for k in range(3)]
        else:
            # TODO(synk): strided-tap loads (pl.ds stride > 1) are not exercised
            # by the demo; validate on target hardware before relying on stride>1.
            taps = [x_ref[0, pl.ds(k, l_out, stride=stride), :]
                    for k in range(3)]
        taps_c = [t.astype(compute_dtype) for t in taps]

        # main branch conv (k=3, pad=1) as three MXU matmuls, f32 accumulation.
        y_m = jnp.dot(taps_c[0], w1_ref[0], preferred_element_type=jnp.float32)
        y_m += jnp.dot(taps_c[1], w1_ref[1], preferred_element_type=jnp.float32)
        y_m += jnp.dot(taps_c[2], w1_ref[2], preferred_element_type=jnp.float32)

        if has_proj:
            # shortcut conv (k=1, stride s) uses the middle tap rows.
            y_s = jnp.dot(taps_c[1], wsc_ref[...],
                          preferred_element_type=jnp.float32)

        @pl.when(p == 0)
        def _accumulate():
            rows = [jnp.sum(y_m, axis=0, keepdims=True),
                    jnp.sum(y_m * y_m, axis=0, keepdims=True)]
            if has_proj:
                rows += [jnp.sum(y_s, axis=0, keepdims=True),
                         jnp.sum(y_s * y_s, axis=0, keepdims=True)]
            stats_ref[...] += jnp.concatenate(rows, axis=0)

        @pl.when(p == 1)
        def _finalize():
            stats = stats_ref[...]          # (2 or 4, C_out_p) f32
            bn = bn_ref[...]                # (2 or 4, C_out_p) f32: gamma/beta

            mean_m = stats[0:1] * inv_m
            var_m = stats[1:2] * inv_m - mean_m * mean_m
            scale_m = bn[0:1] * lax.rsqrt(var_m + EPS)      # EUP rsqrt
            shift_m = bn[1:2] - mean_m * scale_m
            res = y_m * scale_m + shift_m

            if has_proj:
                mean_s = stats[2:3] * inv_m
                var_s = stats[3:4] * inv_m - mean_s * mean_s
                scale_s = bn[2:3] * lax.rsqrt(var_s + EPS)
                shift_s = bn[3:4] - mean_s * scale_s
                res = res + (y_s * scale_s + shift_s)
            else:
                # identity shortcut: x itself (middle tap), kept in f32.
                res = res + taps[1].astype(jnp.float32)

            out_ref[0] = jnp.maximum(res, 0.0)

    return kernel


def init_residual_block_params(key, in_channels, out_channels, stride=1):
    """Deterministic synthetic parameters mirroring the module's __init__ shapes."""
    k1, k2, k3, k4, k5, k6 = jax.random.split(key, 6)
    params = {
        "w1": jax.random.normal(k1, (out_channels, in_channels, 3),
                                jnp.float32) * 0.2,
        "g1": 1.0 + 0.1 * jax.random.normal(k2, (out_channels,), jnp.float32),
        "b1": 0.1 * jax.random.normal(k3, (out_channels,), jnp.float32),
    }
    if stride != 1 or in_channels != out_channels:
        params.update({
            "wsc": jax.random.normal(k4, (out_channels, in_channels, 1),
                                     jnp.float32) * 0.2,
            "gsc": 1.0 + 0.1 * jax.random.normal(k5, (out_channels,),
                                                 jnp.float32),
            "bsc": 0.1 * jax.random.normal(k6, (out_channels,), jnp.float32),
        })
    return params


@functools.partial(jax.jit, static_argnames=("stride", "compute_dtype"))
def residual_block_forward(x, params, stride=1, compute_dtype=jnp.bfloat16):
    """x: (N, C_in, L) f32  ->  (N, C_out, L_out) f32.  Train-mode BatchNorm."""
    N, C_in, L = x.shape
    C_out = params["w1"].shape[0]
    l_out = (L + 2 - 3) // stride + 1
    has_proj = (stride != 1) or (C_in != C_out)

    c_in_p = _round_up(C_in, LANE)
    c_out_p = _round_up(C_out, LANE)
    lp2 = L + 2

    # ---- layout glue: NCL -> NLC, conv padding on L, lane padding on C ------
    x_nlc = jnp.transpose(x, (0, 2, 1))                              # (N, L, C_in)
    x_pad = jnp.pad(x_nlc, ((0, 0), (1, 1), (0, c_in_p - C_in)))     # (N, L+2, C_in_p)
    if has_proj:
        # bf16 activations halve HBM read bytes; identity path keeps f32 so the
        # residual add stays exact.
        x_pad = x_pad.astype(compute_dtype)

    # conv1 weight (C_out, C_in, 3) -> tap-major (3, C_in_p, C_out_p)
    w1 = jnp.transpose(params["w1"], (2, 1, 0))
    w1 = jnp.pad(w1, ((0, 0), (0, c_in_p - C_in), (0, c_out_p - C_out)))
    w1 = w1.astype(compute_dtype)

    def _pad_c(v):
        return jnp.pad(v, (0, c_out_p - C_out))

    if has_proj:
        wsc = jnp.transpose(params["wsc"][:, :, 0], (1, 0))          # (C_in, C_out)
        wsc = jnp.pad(wsc, ((0, c_in_p - C_in), (0, c_out_p - C_out)))
        wsc = wsc.astype(compute_dtype)
        bn = jnp.stack([_pad_c(params["g1"]), _pad_c(params["b1"]),
                        _pad_c(params["gsc"]), _pad_c(params["bsc"])])
        n_stats = 4
    else:
        bn = jnp.stack([_pad_c(params["g1"]), _pad_c(params["b1"])])
        n_stats = 2
    bn = bn.astype(jnp.float32)

    kernel = _make_resblock_kernel(
        stride=stride, l_out=l_out, inv_m=1.0 / float(N * l_out),
        has_proj=has_proj, compute_dtype=compute_dtype)

    # ---- specs --------------------------------------------------------------
    x_spec = pl.BlockSpec((1, lp2, c_in_p), lambda p, b: (b, 0, 0))
    w1_spec = pl.BlockSpec((3, c_in_p, c_out_p), lambda p, b: (0, 0, 0))
    bn_spec = pl.BlockSpec((n_stats, c_out_p), lambda p, b: (0, 0))
    # Output block index ignores the stats pass (p == 0), so no garbage tile is
    # ever written back: block b is only materialized by its pass-1 store.
    out_spec = pl.BlockSpec((1, l_out, c_out_p), lambda p, b: (b * p, 0, 0))

    in_specs = [x_spec, w1_spec]
    inputs = [x_pad, w1]
    if has_proj:
        in_specs.append(pl.BlockSpec((c_in_p, c_out_p), lambda p, b: (0, 0)))
        inputs.append(wsc)
    in_specs.append(bn_spec)
    inputs.append(bn)

    # ---- VMEM budget: double-buffered pipelined blocks + resident weights ---
    item = jnp.dtype(compute_dtype).itemsize
    x_blk = lp2 * c_in_p * (item if has_proj else 4)
    out_blk = l_out * c_out_p * 4
    w_bytes = 3 * c_in_p * c_out_p * item + (c_in_p * c_out_p * item if has_proj else 0)
    bn_bytes = n_stats * c_out_p * 4
    need = 2 * (x_blk + out_blk) + 2 * (w_bytes + bn_bytes) + n_stats * c_out_p * 4
    vmem_limit = int(min(max(2 * need + (1 << 20), 16 << 20), 48 << 20))

    out = pl.pallas_call(
        kernel,
        out_shape=jax.ShapeDtypeStruct((N, l_out, c_out_p), jnp.float32),
        grid_spec=pltpu.PrefetchScalarGridSpec(
            num_scalar_prefetch=0,
            grid=(2, N),
            in_specs=in_specs,
            out_specs=out_spec,
            scratch_shapes=[pltpu.VMEM((n_stats, c_out_p), jnp.float32)]),
        compiler_params=pltpu.CompilerParams(
            dimension_semantics=("arbitrary", "arbitrary"),
            vmem_limit_bytes=vmem_limit),
    )(*inputs)

    # back to PyTorch NCL layout, dropping the lane padding.
    return jnp.transpose(out[:, :, :C_out], (0, 2, 1))


def _reference_forward(x, params, stride=1, compute_dtype=jnp.float32):
    """Pure-JAX reference mirroring the PyTorch forward (train-mode BN).

    Conv inputs are cast to `compute_dtype` with f32 accumulation so the
    reference is precision-matched to the kernel's bf16 MXU path.
    """
    C_in = x.shape[1]
    C_out = params["w1"].shape[0]

    def conv1d(inp, w, s, pad):
        return lax.conv_general_dilated(
            inp.astype(compute_dtype), w.astype(compute_dtype),
            window_strides=(s,), padding=[(pad, pad)],
            dimension_numbers=("NCH", "OIH", "NCH"),
            preferred_element_type=jnp.float32)

    def bn(y, gamma, beta):
        mean = jnp.mean(y, axis=(0, 2), keepdims=True)
        var = jnp.mean((y - mean) ** 2, axis=(0, 2), keepdims=True)
        return ((y - mean) * lax.rsqrt(var + EPS)
                * gamma.reshape(1, -1, 1) + beta.reshape(1, -1, 1))

    out = bn(conv1d(x, params["w1"], stride, 1), params["g1"], params["b1"])
    if (stride != 1) or (C_in != C_out):
        sc = bn(conv1d(x, params["wsc"], stride, 0),
                params["gsc"], params["bsc"])
    else:
        sc = x
    return jnp.maximum(out + sc, 0.0)


if __name__ == "__main__":
    key = jax.random.PRNGKey(0)
    kx1, kp1, kx2, kp2 = jax.random.split(key, 4)

    # Case 1: projection shortcut (stride=1, C_in != C_out) — the demo shapes.
    N, C_in, C_out, L, stride = 2, 4, 8, 16, 1
    x1 = jax.random.normal(kx1, (N, C_in, L), jnp.float32)
    p1 = init_residual_block_params(kp1, C_in, C_out, stride)
    out1 = jax.block_until_ready(residual_block_forward(x1, p1, stride=stride))
    ref1 = jax.block_until_ready(
        _reference_forward(x1, p1, stride=stride, compute_dtype=jnp.bfloat16))
    assert out1.shape == ref1.shape, (out1.shape, ref1.shape)
    err1 = float(jnp.max(jnp.abs(out1 - ref1)))
    assert jnp.allclose(out1, ref1, atol=2e-3, rtol=2e-3), err1

    # Case 2: identity shortcut (stride=1, C_in == C_out).
    x2 = jax.random.normal(kx2, (N, C_out, L), jnp.float32)
    p2 = init_residual_block_params(kp2, C_out, C_out, 1)
    out2 = jax.block_until_ready(residual_block_forward(x2, p2, stride=1))
    ref2 = jax.block_until_ready(
        _reference_forward(x2, p2, stride=1, compute_dtype=jnp.bfloat16))
    assert out2.shape == ref2.shape, (out2.shape, ref2.shape)
    err2 = float(jnp.max(jnp.abs(out2 - ref2)))
    assert jnp.allclose(out2, ref2, atol=2e-3, rtol=2e-3), err2

    print("KERNEL_OK")
</pallas_src>

<mosaic_0001>
module attributes {stable_mosaic.version = 11 : i64} {
  func.func @kernel(%arg0: i32, %arg1: i32, %arg2: memref<1x18x128xbf16, #tpu.memory_space<vmem>>, %arg3: memref<3x128x128xbf16, #tpu.memory_space<vmem>>, %arg4: memref<128x128xbf16, #tpu.memory_space<vmem>>, %arg5: memref<4x128xf32, #tpu.memory_space<vmem>>, %arg6: memref<1x16x128xf32, #tpu.memory_space<vmem>>, %arg7: memref<4x128xf32, #tpu.memory_space<vmem>>) attributes {dimension_semantics = [#tpu.dimension_semantics<arbitrary>, #tpu.dimension_semantics<arbitrary>], iteration_bounds = array<i64: 2, 2>, scalar_prefetch = 0 : i64, scratch_operands = 1 : i64, tpu.core_type = #tpu.core_type<tc>, window_params = [{transform_indices = @transform_0, window_bounds = array<i64: 1, 18, 128>}, {pipeline_mode = #tpu.pipeline_mode<synchronous>, transform_indices = @transform_1, window_bounds = array<i64: 3, 128, 128>}, {pipeline_mode = #tpu.pipeline_mode<synchronous>, transform_indices = @transform_2, window_bounds = array<i64: 128, 128>}, {pipeline_mode = #tpu.pipeline_mode<synchronous>, transform_indices = @transform_3, window_bounds = array<i64: 4, 128>}, {transform_indices = @transform_4, window_bounds = array<i64: 1, 16, 128>}]} {
    %c0_i32 = arith.constant 0 : i32
    %0 = arith.cmpi eq, %arg0, %c0_i32 : i32
    %c0_i32_0 = arith.constant 0 : i32
    %1 = arith.cmpi eq, %arg1, %c0_i32_0 : i32
    %2 = arith.andi %0, %1 : i1
    %3 = arith.extui %2 : i1 to i32
    %c0_i32_1 = arith.constant 0 : i32
    %4 = arith.cmpi ne, %3, %c0_i32_1 : i32
    scf.if %4 {
      %cst_19 = arith.constant 0.000000e+00 : f32
      %29 = vector.broadcast %cst_19 : f32 to vector<4x128xf32>
      %c0_20 = arith.constant 0 : index
      %c0_21 = arith.constant 0 : index
      %30 = vector.load %arg7[%c0_20, %c0_21] : memref<4x128xf32, #tpu.memory_space<vmem>>, vector<4x128xf32>
      tpu.vector_store %arg7[%c0_20, %c0_21], %29 {strides = array<i32>} : memref<4x128xf32, #tpu.memory_space<vmem>>, vector<4x128xf32>,
    } else {
    }
    %c0 = arith.constant 0 : index
    %c0_2 = arith.constant 0 : index
    %c0_3 = arith.constant 0 : index
    %5 = vector.load %arg2[%c0, %c0_2, %c0_3] : memref<1x18x128xbf16, #tpu.memory_space<vmem>>, vector<1x18x128xbf16>
    %6 = vector.shape_cast %5 : vector<1x18x128xbf16> to vector<18x128xbf16>
    %7 = vector.extract_strided_slice %6 {offsets = [0, 0], sizes = [16, 128], strides = [1, 1]} : vector<18x128xbf16> to vector<16x128xbf16>
    %8 = vector.extract_strided_slice %6 {offsets = [1, 0], sizes = [16, 128], strides = [1, 1]} : vector<18x128xbf16> to vector<16x128xbf16>
    %9 = vector.extract_strided_slice %6 {offsets = [2, 0], sizes = [16, 128], strides = [1, 1]} : vector<18x128xbf16> to vector<16x128xbf16>
    %c0_4 = arith.constant 0 : index
    %c0_5 = arith.constant 0 : index
    %c0_6 = arith.constant 0 : index
    %10 = vector.load %arg3[%c0_4, %c0_5, %c0_6] : memref<3x128x128xbf16, #tpu.memory_space<vmem>>, vector<1x128x128xbf16>
    %11 = vector.shape_cast %10 : vector<1x128x128xbf16> to vector<128x128xbf16>
    %cst = arith.constant dense<0.000000e+00> : vector<16x128xf32>
    %12 = tpu.matmul %7, %11, %cst {dimension_numbers = #tpu.dot_dimension_numbers<[1], [0], [0], [1], [0, 0, 1, 1], [], []>} : vector<16x128xbf16>, vector<128x128xbf16>, vector<16x128xf32> -> vector<16x128xf32>
    %c1 = arith.constant 1 : index
    %c0_7 = arith.constant 0 : index
    %c0_8 = arith.constant 0 : index
    %13 = vector.load %arg3[%c1, %c0_7, %c0_8] : memref<3x128x128xbf16, #tpu.memory_space<vmem>>, vector<1x128x128xbf16>
    %14 = vector.shape_cast %13 : vector<1x128x128xbf16> to vector<128x128xbf16>
    %cst_9 = arith.constant dense<0.000000e+00> : vector<16x128xf32>
    %15 = tpu.matmul %8, %14, %cst_9 {dimension_numbers = #tpu.dot_dimension_numbers<[1], [0], [0], [1], [0, 0, 1, 1], [], []>} : vector<16x128xbf16>, vector<128x128xbf16>, vector<16x128xf32> -> vector<16x128xf32>
    %16 = arith.addf %12, %15 : vector<16x128xf32>
    %c2 = arith.constant 2 : index
    %c0_10 = arith.constant 0 : index
    %c0_11 = arith.constant 0 : index
    %17 = vector.load %arg3[%c2, %c0_10, %c0_11] : memref<3x128x128xbf16, #tpu.memory_space<vmem>>, vector<1x128x128xbf16>
    %18 = vector.shape_cast %17 : vector<1x128x128xbf16> to vector<128x128xbf16>
    %cst_12 = arith.constant dense<0.000000e+00> : vector<16x128xf32>
    %19 = tpu.matmul %9, %18, %cst_12 {dimension_numbers = #tpu.dot_dimension_numbers<[1], [0], [0], [1], [0, 0, 1, 1], [], []>} : vector<16x128xbf16>, vector<128x128xbf16>, vector<16x128xf32> -> vector<16x128xf32>
    %20 = arith.addf %16, %19 : vector<16x128xf32>
    %c0_13 = arith.constant 0 : index
    %c0_14 = arith.constant 0 : index
    %21 = vector.load %arg4[%c0_13, %c0_14] : memref<128x128xbf16, #tpu.memory_space<vmem>>, vector<128x128xbf16>
    %cst_15 = arith.constant dense<0.000000e+00> : vector<16x128xf32>
    %22 = tpu.matmul %8, %21, %cst_15 {dimension_numbers = #tpu.dot_dimension_numbers<[1], [0], [0], [1], [0, 0, 1, 1], [], []>} : vector<16x128xbf16>, vector<128x128xbf16>, vector<16x128xf32> -> vector<16x128xf32>
    %c0_i32_16 = arith.constant 0 : i32
    %23 = arith.cmpi eq, %arg0, %c0_i32_16 : i32
    %24 = arith.extui %23 : i1 to i32
    %c0_i32_17 = arith.constant 0 : i32
    %25 = arith.cmpi ne, %24, %c0_i32_17 : i32
    scf.if %25 {
      %cst_19 = arith.constant dense<0.000000e+00> : vector<128xf32>
      %29 = vector.multi_reduction <add>, %20, %cst_19 [0] : vector<16x128xf32> to vector<128xf32>
      %30 = vector.shape_cast %29 : vector<128xf32> to vector<1x128xf32>
      %31 = arith.mulf %20, %20 : vector<16x128xf32>
      %cst_20 = arith.constant dense<0.000000e+00> : vector<128xf32>
      %32 = vector.multi_reduction <add>, %31, %cst_20 [0] : vector<16x128xf32> to vector<128xf32>
      %33 = vector.shape_cast %32 : vector<128xf32> to vector<1x128xf32>
      %cst_21 = arith.constant dense<0.000000e+00> : vector<128xf32>
      %34 = vector.multi_reduction <add>, %22, %cst_21 [0] : vector<16x128xf32> to vector<128xf32>
      %35 = vector.shape_cast %34 : vector<128xf32> to vector<1x128xf32>
      %36 = arith.mulf %22, %22 : vector<16x128xf32>
      %cst_22 = arith.constant dense<0.000000e+00> : vector<128xf32>
      %37 = vector.multi_reduction <add>, %36, %cst_22 [0] : vector<16x128xf32> to vector<128xf32>
      %38 = vector.shape_cast %37 : vector<128xf32> to vector<1x128xf32>
      %c0_23 = arith.constant 0 : index
      %c0_24 = arith.constant 0 : index
      %39 = vector.load %arg7[%c0_23, %c0_24] : memref<4x128xf32, #tpu.memory_space<vmem>>, vector<4x128xf32>
      %40 = tpu.concatenate %30, %33, %35, %38 in 0 : vector<1x128xf32>, vector<1x128xf32>, vector<1x128xf32>, vector<1x128xf32> -> vector<4x128xf32>
      %41 = arith.addf %39, %40 : vector<4x128xf32>
      %c0_25 = arith.constant 0 : index
      %c0_26 = arith.constant 0 : index
      %42 = vector.load %arg7[%c0_25, %c0_26] : memref<4x128xf32, #tpu.memory_space<vmem>>, vector<4x128xf32>
      tpu.vector_store %arg7[%c0_25, %c0_26], %41 {strides = array<i32>} : memref<4x128xf32, #tpu.memory_space<vmem>>, vector<4x128xf32>,
    } else {
    }
    %c1_i32 = arith.constant 1 : i32
    %26 = arith.cmpi eq, %arg0, %c1_i32 : i32
    %27 = arith.extui %26 : i1 to i32
    %c0_i32_18 = arith.constant 0 : i32
    %28 = arith.cmpi ne, %27, %c0_i32_18 : i32
    scf.if %28 {
      %c0_19 = arith.constant 0 : index
      %c0_20 = arith.constant 0 : index
      %29 = vector.load %arg7[%c0_19, %c0_20] : memref<4x128xf32, #tpu.memory_space<vmem>>, vector<4x128xf32>
      %c0_21 = arith.constant 0 : index
      %c0_22 = arith.constant 0 : index
      %30 = vector.load %arg5[%c0_21, %c0_22] : memref<4x128xf32, #tpu.memory_space<vmem>>, vector<4x128xf32>
      %31 = vector.extract_strided_slice %29 {offsets = [0, 0], sizes = [1, 128], strides = [1, 1]} : vector<4x128xf32> to vector<1x128xf32>
      %cst_23 = arith.constant 3.125000e-02 : f32
      %32 = vector.broadcast %cst_23 : f32 to vector<1x128xf32>
      %33 = arith.mulf %31, %32 : vector<1x128xf32>
      %34 = vector.extract_strided_slice %29 {offsets = [1, 0], sizes = [1, 128], strides = [1, 1]} : vector<4x128xf32> to vector<1x128xf32>
      %cst_24 = arith.constant 3.125000e-02 : f32
      %35 = vector.broadcast %cst_24 : f32 to vector<1x128xf32>
      %36 = arith.mulf %34, %35 : vector<1x128xf32>
      %37 = arith.mulf %33, %33 : vector<1x128xf32>
      %38 = arith.subf %36, %37 : vector<1x128xf32>
      %39 = vector.extract_strided_slice %30 {offsets = [0, 0], sizes = [1, 128], strides = [1, 1]} : vector<4x128xf32> to vector<1x128xf32>
      %cst_25 = arith.constant 9.99999974E-6 : f32
      %40 = vector.broadcast %cst_25 : f32 to vector<1x128xf32>
      %41 = arith.addf %38, %40 : vector<1x128xf32>
      %42 = math.rsqrt %41 : vector<1x128xf32>
      %43 = arith.mulf %39, %42 : vector<1x128xf32>
      %44 = vector.extract_strided_slice %30 {offsets = [1, 0], sizes = [1, 128], strides = [1, 1]} : vector<4x128xf32> to vector<1x128xf32>
      %45 = arith.mulf %33, %43 : vector<1x128xf32>
      %46 = arith.subf %44, %45 : vector<1x128xf32>
      %47 = vector.broadcast %43 : vector<1x128xf32> to vector<16x128xf32>
      %48 = arith.mulf %20, %47 : vector<16x128xf32>
      %49 = vector.broadcast %46 : vector<1x128xf32> to vector<16x128xf32>
      %50 = arith.addf %48, %49 : vector<16x128xf32>
      %51 = vector.extract_strided_slice %29 {offsets = [2, 0], sizes = [1, 128], strides = [1, 1]} : vector<4x128xf32> to vector<1x128xf32>
      %cst_26 = arith.constant 3.125000e-02 : f32
      %52 = vector.broadcast %cst_26 : f32 to vector<1x128xf32>
      %53 = arith.mulf %51, %52 : vector<1x128xf32>
      %54 = vector.extract_strided_slice %29 {offsets = [3, 0], sizes = [1, 128], strides = [1, 1]} : vector<4x128xf32> to vector<1x128xf32>
      %cst_27 = arith.constant 3.125000e-02 : f32
      %55 = vector.broadcast %cst_27 : f32 to vector<1x128xf32>
      %56 = arith.mulf %54, %55 : vector<1x128xf32>
      %57 = arith.mulf %53, %53 : vector<1x128xf32>
      %58 = arith.subf %56, %57 : vector<1x128xf32>
      %59 = vector.extract_strided_slice %30 {offsets = [2, 0], sizes = [1, 128], strides = [1, 1]} : vector<4x128xf32> to vector<1x128xf32>
      %cst_28 = arith.constant 9.99999974E-6 : f32
      %60 = vector.broadcast %cst_28 : f32 to vector<1x128xf32>
      %61 = arith.addf %58, %60 : vector<1x128xf32>
      %62 = math.rsqrt %61 : vector<1x128xf32>
      %63 = arith.mulf %59, %62 : vector<1x128xf32>
      %64 = vector.extract_strided_slice %30 {offsets = [3, 0], sizes = [1, 128], strides = [1, 1]} : vector<4x128xf32> to vector<1x128xf32>
      %65 = arith.mulf %53, %63 : vector<1x128xf32>
      %66 = arith.subf %64, %65 : vector<1x128xf32>
      %67 = vector.broadcast %63 : vector<1x128xf32> to vector<16x128xf32>
      %68 = arith.mulf %22, %67 : vector<16x128xf32>
      %69 = vector.broadcast %66 : vector<1x128xf32> to vector<16x128xf32>
      %70 = arith.addf %68, %69 : vector<16x128xf32>
      %71 = arith.addf %50, %70 : vector<16x128xf32>
      %cst_29 = arith.constant 0.000000e+00 : f32
      %72 = vector.broadcast %cst_29 : f32 to vector<16x128xf32>
      %73 = arith.maximumf %71, %72 : vector<16x128xf32>
      %c0_30 = arith.constant 0 : index
      %c0_31 = arith.constant 0 : index
      %c0_32 = arith.constant 0 : index
      %74 = vector.load %arg6[%c0_30, %c0_31, %c0_32] : memref<1x16x128xf32, #tpu.memory_space<vmem>>, vector<1x16x128xf32>
      %75 = vector.shape_cast %74 : vector<1x16x128xf32> to vector<16x128xf32>
      %76 = vector.shape_cast %73 : vector<16x128xf32> to vector<1x16x128xf32>
      tpu.vector_store %arg6[%c0_30, %c0_31, %c0_32], %76 {strides = array<i32>} : memref<1x16x128xf32, #tpu.memory_space<vmem>>, vector<1x16x128xf32>,
    } else {
    }
    return
  }
  func.func @transform_0(%arg0: i32, %arg1: i32) -> (i32, i32, i32) {
    %c0_i32 = arith.constant 0 : i32
    %c0_i32_0 = arith.constant 0 : i32
    %c0_i32_1 = arith.constant 0 : i32
    return %arg1, %c0_i32, %c0_i32_0 : i32, i32, i32
  }
  func.func @transform_1(%arg0: i32, %arg1: i32) -> (i32, i32, i32) {
    %c0_i32 = arith.constant 0 : i32
    %c0_i32_0 = arith.constant 0 : i32
    %c0_i32_1 = arith.constant 0 : i32
    %c0_i32_2 = arith.constant 0 : i32
    return %c0_i32, %c0_i32_0, %c0_i32_1 : i32, i32, i32
  }
  func.func @transform_2(%arg0: i32, %arg1: i32) -> (i32, i32) {
    %c0_i32 = arith.constant 0 : i32
    %c0_i32_0 = arith.constant 0 : i32
    %c0_i32_1 = arith.constant 0 : i32
    return %c0_i32, %c0_i32_0 : i32, i32
  }
  func.func @transform_3(%arg0: i32, %arg1: i32) -> (i32, i32) {
    %c0_i32 = arith.constant 0 : i32
    %c0_i32_0 = arith.constant 0 : i32
    %c0_i32_1 = arith.constant 0 : i32
    return %c0_i32, %c0_i32_0 : i32, i32
  }
  func.func @transform_4(%arg0: i32, %arg1: i32) -> (i32, i32, i32) {
    %0 = arith.muli %arg1, %arg0 : i32
    %c0_i32 = arith.constant 0 : i32
    %c0_i32_0 = arith.constant 0 : i32
    %c0_i32_1 = arith.constant 0 : i32
    return %0, %c0_i32, %c0_i32_0 : i32, i32, i32
  }
}

</mosaic_0001>

<bundles_post_ra>
// kernel: residual_block_forward.1
= control target key start
LH: loop header
LB: loop body
LE: loop exit
PB: predicated region body
PF: predicated region fallthrough
CT: control target
= control target key end

     0   :  { %s1194_s15 = smov 0   ;;  %s1196_s16 = smov 0   ;;  %s1432_s0 = inlined_call_operand.vmem [shape: bf16[2,18,128], index: 0, kind: input, shape index: {}]   ;;  %s1433_s1 = inlined_call_operand.vmem [shape: bf16[3,128,128], index: 1, kind: input, shape index: {}]   ;;  %s1434_s2 = inlined_call_operand.vmem [shape: bf16[128,128], index: 2, kind: input, shape index: {}]   ;;  %s1435_s3 = inlined_call_operand.vmem [shape: f32[4,128], index: 3, kind: input, shape index: {}]   ;;  %s1436_s4 = inlined_call_operand.vmem [shape: f32[2,16,128], index: 4, kind: output, shape index: {}]  }
   0x1   :  { %s1198_s17 = smov 0   ;;  %s1200_s18 = smov 0  }
   0x2   :  { %s1202_s19 = smov 0  }
   0x3 LB: > { %s23_s20 = sadd.s32 1, %s1156_s17  ;;  %s26_s21 = sadd.s32 1, %s1160_s18  ;;  %s1164_s19 = sphi %s1202_s19, %s14_s19   ;;  %s1160_s18 = sphi %s1200_s18, %s1440_s18   ;;  %s1156_s17 = sphi %s1198_s17, %s1439_s17   ;;  %s1152_s16 = sphi %s1196_s16, %s1438_s16   ;;  %s1148_s15 = sphi %s1194_s15, %s1437_s15  }
   0x4   : > { %p24_p0 = scmp.ge.s32.totalorder %s23_s20, 2  ;;  %p849_p1 = scmp.ge.s32.totalorder %s1164_s19, 1 }
   0x5   : > { %p176_p2 = scmp.lt.s32.totalorder %s1164_s19, 5 }
   0x6   : > { %s1442_s20 = smov (%p24_p0, %s23_s20), 0  ;;  %s1444_s21 = smov (!%p24_p0, %s26_s21), %s1160_s18 }
   0x7   : > { %p177_p3 = pnand %p849_p1, %p176_p2  ;;  %p28_p4 = scmp.ge.s32.totalorder %s1444_s21, 2 }
   0x8   : > { %p203_p5 = scmp.lt.s32.totalorder (!%p177_p3), %s1148_s15, 1  ;;  %s208_s22 = smul.u32 (!%p177_p3), %s1148_s15, %s1152_s16 }
   0x9   : > { %s1446_s21 = smov (%p28_p4, %s1444_s21), 0  ;;  %180 = sbr.rel (%p177_p3) target bundleno = 376 (0x178), region = 36 }
   0xa   : > { %p216_p6 = scmp.eq.s32.totalorder (!%p177_p3), %s1152_s16, 0  ;;  %p217_p7 = scmp.eq.s32.totalorder (!%p177_p3), %s1148_s15, 0 }
   0xb   : > { %p209_p8 = scmp.lt.s32.totalorder (!%p177_p3), %s208_s22, 1 }
   0xc   : > { %p218_p9 = pnand (!%p177_p3), %p217_p7, %p216_p6 }
  0x10   : > { %s1448_s15 = smov (!%p203_p5, %s1148_s15), 1  ;;  %s1450_s22 = smov (!%p209_p8, %s208_s22), 1 }
  0x11   : > { %s1046_s23 = smul.u32 12, %s1448_s15  ;;  %s923_s27 = sshll.u32 %s1450_s22, 4  ;;  %v1166_v0 = vmov (!%p218_p9), 0.0  }
  0x12   : > { %s1236_s30 = scalar_lea.vmem %s1436_s4, %s923_s27  ;;  %221 = sbr.rel (%p218_p9) target bundleno = 25 (0x19), region = 40  ;;  %222 = vst [vmem:[#allocation2] sm:$0xf] (!%p218_p9), %v1166_v0 }
  0x13   : > { %s1231_s26 = scalar_lea.vmem %s1432_s0, %s1046_s23 }
  0x19 PF: > { %v1090_v1 = vld [vmem:[%s1433_s1 + $0x40] sm:$0xff]   ;;  %v1167_v2 = vmov 0.0   ;;  %v1092_v4 = vld [vmem:[%s1433_s1 + $0x48] sm:$0xff]   ;;  %vm1168_vm0 = vmmov 0   ;;  %v1094_v6 = vld [vmem:[%s1433_s1 + $0x50] sm:$0xff]   ;;  %vm477_vm2 = vcmask 1046528  }
  0x1a   : > { %960 = vmatprep.subr.bf16.mxu1 %v1167_v2  ;;  %980 = vmatprep.subr.bf16.mxu0 %v1167_v2  ;;  %v1091_v3 = vld [vmem:[%s1433_s1] sm:$0xff]   ;;  %v1093_v5 = vld [vmem:[%s1433_s1 + $0x8] sm:$0xff]   ;;  %v1095_v7 = vld [vmem:[%s1433_s1 + $0x10] sm:$0xff]   ;;  %vm267_vm1 = vsmask.f32 7424  ;;  %p919_p10 = scmp.ne.s32.totalorder %s1152_s16, 0 }
  0x1b   : > { %961 = vmatpush3.bf16.msra.mxu1 %v1090_v1  ;;  %976 = vmatprep.mubr.msk.bf16.mxu1 %vm1168_vm0, %v1167_v2  ;;  %v1096_v8 = vld [vmem:[%s1433_s1 + $0x58] sm:$0xff]   ;;  %v1098_v10 = vld [vmem:[%s1433_s1 + $0x60] sm:$0xff]   ;;  %v1286_v13 = vld [vmem:[%s1231_s26 + $0x8] ss:$0 sps:$4 sm:$0x11]   ;;  %vm714_vm3 = vcmask (!%p919_p10), 1040384  }
  0x1c   : > { %981 = vmatpush3.bf16.msra.mxu0 %v1091_v3  ;;  %962 = vmatprep.subr.bf16.mxu1 %v1167_v2  ;;  %v1097_v9 = vld [vmem:[%s1433_s1 + $0x18] sm:$0xff]   ;;  %v1099_v11 = vld [vmem:[%s1433_s1 + $0x20] sm:$0xff]   ;;  %v1100_v14 = vld [vmem:[%s1433_s1 + $0x68] sm:$0xff]   ;;  %v276_v20 = vshll.u32 %v1286_v13, 16  ;;  %v479_v44 = vrot.slane %v1286_v13, 1  ;;  %vm716_vm4 = vcmask (!%p919_p10), 1041408  }
  0x1d   : > { %982 = vmatprep.subr.bf16.mxu0 %v1167_v2  ;;  %996 = vmatprep.mubr.msk.bf16.mxu0 %vm1168_vm0, %v1167_v2  ;;  %v1283_v12 = vld [vmem:[%s1231_s26] sm:$0xff]   ;;  %v1101_v15 = vld [vmem:[%s1433_s1 + $0x28] sm:$0xff]   ;;  %v1102_v17 = vld [vmem:[%s1433_s1 + $0x70] sm:$0xff]   ;;  %vm718_vm5 = vcmask (!%p919_p10), 1042432  }
  0x1e   : > { %v271_v16 = vshll.u32 %v1283_v12, 16  ;;  %v269_v18 = vshrl.u32 %v1283_v12, 16  ;;  %v1103_v21 = vld [vmem:[%s1433_s1 + $0x30] sm:$0xff]   ;;  %v1104_v22 = vld [vmem:[%s1433_s1 + $0x78] sm:$0xff]   ;;  %v278_v25 = vrot.slane %v276_v20, 1  ;;  %v1109_v27 = vld [vmem:[%s1434_s2] sm:$0xff]  }
  0x1f   : > { %963 = vmatpush3.bf16.msra.mxu1 %v1092_v4  ;;  %v1105_v23 = vld [vmem:[%s1433_s1 + $0x38] sm:$0xff]   ;;  %v1108_v28 = vld [vmem:[%s1433_s1 + $0x80] sm:$0xff]   ;;  %v1111_v29 = vld [vmem:[%s1434_s2 + $0x8] sm:$0xff]   ;;  %v478_v43 = vrot.slane %v1283_v12, 1 }
  0x20   : > { %983 = vmatpush3.bf16.msra.mxu0 %v1093_v5  ;;  %964 = vmatprep.subr.bf16.mxu1 %v1167_v2  ;;  %v273_v19 = vrot.slane %v271_v16, 1  ;;  %v1110_v30 = vld [vmem:[%s1433_s1 + $0x88] sm:$0xff]   ;;  %v1113_v31 = vld [vmem:[%s1434_s2 + $0x10] sm:$0xff]   ;;  %v1115_v33 = vld [vmem:[%s1434_s2 + $0x18] sm:$0xff]  }
  0x21   : > { %984 = vmatprep.subr.bf16.mxu0 %v1167_v2  ;;  %v1112_v32 = vld [vmem:[%s1433_s1 + $0x90] sm:$0xff]   ;;  %v1114_v34 = vld [vmem:[%s1433_s1 + $0x98] sm:$0xff]   ;;  %v1117_v35 = vld [vmem:[%s1434_s2 + $0x20] sm:$0xff]   ;;  %v480_v45 = vsel %vm477_vm2, %v478_v43, %v479_v44 }
  0x22   : > { %v274_v24 = vor.u32 %v273_v19, %v269_v18  ;;  %v1116_v36 = vld [vmem:[%s1433_s1 + $0xa0] sm:$0xff]   ;;  %v1119_v37 = vld [vmem:[%s1434_s2 + $0x28] sm:$0xff]   ;;  %v1121_v39 = vld [vmem:[%s1434_s2 + $0x30] sm:$0xff]  }
  0x23   : > { %965 = vmatpush3.bf16.msra.mxu1 %v1094_v6  ;;  %v1118_v38 = vld [vmem:[%s1433_s1 + $0xa8] sm:$0xff]   ;;  %v1120_v40 = vld [vmem:[%s1433_s1 + $0xb0] sm:$0xff]   ;;  %v1123_v41 = vld [vmem:[%s1434_s2 + $0x38] sm:$0xff]  }
  0x24   : > { %985 = vmatpush3.bf16.msra.mxu0 %v1095_v7  ;;  %966 = vmatprep.subr.bf16.mxu1 %v1167_v2  ;;  %v279_v26 = vsel %vm267_vm1, %v274_v24, %v278_v25  ;;  %v1122_v42 = vld [vmem:[%s1433_s1 + $0xb8] sm:$0xff]  }
  0x25   : > { %986 = vmatprep.subr.bf16.mxu0 %v1167_v2 }
  0x27   : > { %967 = vmatpush3.bf16.msra.mxu1 %v1096_v8 }
  0x28   : > { %987 = vmatpush3.bf16.msra.mxu0 %v1097_v9  ;;  %968 = vmatprep.subr.bf16.mxu1 %v1167_v2 }
  0x29   : > { %988 = vmatprep.subr.bf16.mxu0 %v1167_v2 }
  0x2b   : > { %969 = vmatpush3.bf16.msra.mxu1 %v1098_v10 }
  0x2c   : > { %989 = vmatpush3.bf16.msra.mxu0 %v1099_v11  ;;  %970 = vmatprep.subr.bf16.mxu1 %v1167_v2 }
  0x2d   : > { %990 = vmatprep.subr.bf16.mxu0 %v1167_v2 }
  0x2f   : > { %971 = vmatpush3.bf16.msra.mxu1 %v1100_v14 }
  0x30   : > { %991 = vmatpush3.bf16.msra.mxu0 %v1101_v15  ;;  %972 = vmatprep.subr.bf16.mxu1 %v1167_v2 }
  0x31   : > { %992 = vmatprep.subr.bf16.mxu0 %v1167_v2 }
  0x33   : > { %973 = vmatpush3.bf16.msra.mxu1 %v1102_v17 }
  0x34   : > { %993 = vmatpush3.bf16.msra.mxu0 %v1103_v21  ;;  %974 = vmatprep.subr.bf16.mxu1 %v1167_v2 }
  0x35   : > { %994 = vmatprep.subr.bf16.mxu0 %v1167_v2 }
  0x37   : > { %975 = vmatpush3.bf16.msra.mxu1 %v1104_v22 }
  0x38   : > { %995 = vmatpush3.bf16.msra.mxu0 %v1105_v23  ;;  %1020 = vmatprep.subr.bf16.mxu1 %v1167_v2 }
  0x39   : > { %1000 = vmatprep.subr.bf16.mxu0 %v1167_v2 }
  0x3a   : > { %977 = vmatmul.mubr.bf16.vlgmr.msra.gmra.mrb[0].mxu1 %v279_v26 }
  0x3b   : > { %997 = vmatmul.mubr.bf16.vlgmr.msra.gmra.mrb[0].mxu0 %v1283_v12  ;;  %1021 = vmatpush3.bf16.msra.mxu1 %v1109_v27 }
  0x3c   : > { %1001 = vmatpush3.bf16.msra.mxu0 %v1108_v28  ;;  %1022 = vmatprep.subr.bf16.mxu1 %v1167_v2  ;;  %v713_v28 = vld [vmem:[#allocation2] sm:$0xf] (!%p919_p10) }
  0x3d   : > { %1002 = vmatprep.subr.bf16.mxu0 %v1167_v2  ;;  %1016 = vmatprep.mubr.msk.bf16.mxu0 %vm1168_vm0, %v1167_v2 }
  0x3e   : > { %1036 = vmatprep.mubr.msk.bf16.mxu1 %vm1168_vm0, %v1167_v2 }
  0x3f   : > { %1023 = vmatpush3.bf16.msra.mxu1 %v1111_v29 }
  0x40   : > { %1003 = vmatpush3.bf16.msra.mxu0 %v1110_v30  ;;  %1024 = vmatprep.subr.bf16.mxu1 %v1167_v2 }
  0x41   : > { %1004 = vmatprep.subr.bf16.mxu0 %v1167_v2 }
  0x43   : > { %1025 = vmatpush3.bf16.msra.mxu1 %v1113_v31 }
  0x44   : > { %1005 = vmatpush3.bf16.msra.mxu0 %v1112_v32  ;;  %1026 = vmatprep.subr.bf16.mxu1 %v1167_v2 }
  0x45   : > { %1006 = vmatprep.subr.bf16.mxu0 %v1167_v2 }
  0x47   : > { %1027 = vmatpush3.bf16.msra.mxu1 %v1115_v33 }
  0x48   : > { %1007 = vmatpush3.bf16.msra.mxu0 %v1114_v34  ;;  %1028 = vmatprep.subr.bf16.mxu1 %v1167_v2 }
  0x49   : > { %1008 = vmatprep.subr.bf16.mxu0 %v1167_v2 }
  0x4b   : > { %1029 = vmatpush3.bf16.msra.mxu1 %v1117_v35 }
  0x4c   : > { %1009 = vmatpush3.bf16.msra.mxu0 %v1116_v36  ;;  %1030 = vmatprep.subr.bf16.mxu1 %v1167_v2 }
  0x4d   : > { %1010 = vmatprep.subr.bf16.mxu0 %v1167_v2 }
  0x4f   : > { %1031 = vmatpush3.bf16.msra.mxu1 %v1119_v37 }
  0x50   : > { %1011 = vmatpush3.bf16.msra.mxu0 %v1118_v38  ;;  %1032 = vmatprep.subr.bf16.mxu1 %v1167_v2 }
  0x51   : > { %1012 = vmatprep.subr.bf16.mxu0 %v1167_v2 }
  0x53   : > { %1033 = vmatpush3.bf16.msra.mxu1 %v1121_v39 }
  0x54   : > { %1013 = vmatpush3.bf16.msra.mxu0 %v1120_v40  ;;  %1034 = vmatprep.subr.bf16.mxu1 %v1167_v2 }
  0x55   : > { %1014 = vmatprep.subr.bf16.mxu0 %v1167_v2 }
  0x57   : > { %1035 = vmatpush3.bf16.msra.mxu1 %v1123_v41 }
  0x58   : > { %1015 = vmatpush3.bf16.msra.mxu0 %v1122_v42 }
  0x5a   : > { %1037 = vmatmul.mubr.bf16.vlgmr.msra.gmra.mrb[4].mxu1 %v279_v26 }
  0x5b   : > { %1017 = vmatmul.mubr.bf16.vlgmr.msra.gmra.mrb[0].mxu0 %v480_v45 }
 0x10d   : > { %v363_v46 = vpop.f32.mrb[0].mxu1 }
 0x10e   : > { %v978_v47 = vpop.f32.mrb[1].mxu1 }
 0x10f   : > { %v366_v48 = vpop.f32.mrb[2].mxu1 }
 0x110   : > { %v979_v49 = vpop.f32.mrb[3].mxu1 }
 0x12b   : > { %680 = sbr.rel (%p919_p10) target bundleno = 329 (0x149), region = 44 }
 0x12d   : > { %v1386_v50 = vpop.f32.mrb[4].mxu1 }
 0x12e   : > { %v564_v51 = vpop.f32.mrb[0].mxu0  ;;  %v1038_v52 = vpop.f32.mrb[5].mxu1  ;;  %v704_v0 = vmul.f32 (!%p919_p10), %v1386_v50, %v1386_v50 }
 0x12f   : > { %v1388_v53 = vadd.f32 %v564_v51, %v363_v46  ;;  %v1018_v54 = vpop.f32.mrb[1].mxu0  ;;  %v1390_v55 = vpop.f32.mrb[6].mxu1 }
 0x130   : > { %v567_v56 = vpop.f32.mrb[2].mxu0  ;;  %v1039_v57 = vpop.f32.mrb[7].mxu1  ;;  %v697_v63 = vadd.f32 (!%p919_p10), %v1390_v55, %v1386_v50  ;;  %v705_v1 = vmul.f32 (!%p919_p10), %v1390_v55, %v1390_v55 }
 0x131   : > { %v1392_v58 = vadd.f32 %v567_v56, %v366_v48  ;;  %v1019_v59 = vpop.f32.mrb[3].mxu0  ;;  %v688_v61 = vmul.f32 (!%p919_p10), %v1388_v53, %v1388_v53 }
 0x132   : > { %v698_v4 = vrot.slane %v697_v63, 4  ;;  %v706_v5 = vadd.f32 %v705_v1, %v704_v0 }
 0x133   : > { %v681_v60 = vadd.f32 %v1392_v58, %v1388_v53  ;;  %v689_v62 = vmul.f32 %v1392_v58, %v1392_v58 }
 0x134   : > { %v699_v8 = vadd.f32 %v698_v4, %v697_v63  ;;  %v707_v9 = vrot.slane %v706_v5, 4 }
 0x135   : > { %v682_v2 = vrot.slane %v681_v60, 4  ;;  %v690_v3 = vadd.f32 %v689_v62, %v688_v61 }
 0x136   : > { %v700_v12 = vrot.slane %v699_v8, 2  ;;  %v708_v13 = vadd.f32 %v707_v9, %v706_v5 }
 0x137   : > { %v683_v6 = vadd.f32 %v682_v2, %v681_v60  ;;  %v691_v7 = vrot.slane %v690_v3, 4 }
 0x138   : > { %v701_v16 = vadd.f32 %v700_v12, %v699_v8  ;;  %v709_v17 = vrot.slane %v708_v13, 2 }
 0x139   : > { %v684_v10 = vrot.slane %v683_v6, 2  ;;  %v692_v11 = vadd.f32 %v691_v7, %v690_v3 }
 0x13a   : > { %v702_v20 = vrot.slane %v701_v16, 1  ;;  %v710_v21 = vadd.f32 %v709_v17, %v708_v13 }
 0x13b   : > { %v685_v14 = vadd.f32 %v684_v10, %v683_v6  ;;  %v693_v15 = vrot.slane %v692_v11, 2 }
 0x13c   : > { %v703_v24 = vadd.f32 %v702_v20, %v701_v16  ;;  %v711_v25 = vrot.slane %v710_v21, 1 }
 0x13d   : > { %v686_v18 = vrot.slane %v685_v14, 1  ;;  %v694_v19 = vadd.f32 %v693_v15, %v692_v11 }
 0x13e   : > { %v712_v27 = vadd.f32 %v711_v25, %v710_v21 }
 0x13f   : > { %v687_v22 = vadd.f32 %v686_v18, %v685_v14  ;;  %v695_v23 = vrot.slane %v694_v19, 1 }
 0x141   : > { %v696_v26 = vadd.f32 %v695_v23, %v694_v19 }
 0x143   : > { %v715_v29 = vsel %vm714_vm3, %v687_v22, %v696_v26 }
 0x144   : > { %v717_v30 = vsel %vm716_vm4, %v715_v29, %v703_v24 }
 0x145   : > { %v719_v31 = vsel %vm718_vm5, %v717_v30, %v712_v27 }
 0x146   : > { %v720_v32 = vadd.f32 %v719_v31, %v713_v28 }
 0x148   : > { %721 = vst [vmem:[#allocation2] sm:$0xf] %v720_v32 }
 0x149 PF: > { %p920_p11 = scmp.ne.s32.totalorder %s1152_s16, 1 }
 0x14a   : > { %v745_v39 = vlaneseq (!%p920_p11)  ;;  %v727_v42 = vld [vmem:[%s1435_s3] sm:$0xf] (!%p920_p11) }
 0x14b   : > { %725 = sbr.rel (%p920_p11) target bundleno = 376 (0x178), region = 48 }
 0x14c   : > { %v746_v40 = vshrl.u32 (!%p920_p11), %v745_v39, 7 }
 0x14e   : > { %v747_v44 = vsub.s32 (!%p920_p11), 0, %v746_v40  ;;  %v759_v45 = vsub.s32 (!%p920_p11), 2, %v746_v40  ;;  %v753_v52 = vsub.s32 (!%p920_p11), 1, %v746_v40  ;;  %v765_v54 = vsub.s32 (!%p920_p11), 3, %v746_v40 }
 0x14f   : > { %v726_v33 = vld [vmem:[#allocation2] sm:$0xf] (!%p920_p11) }
 0x150   : > { %v728_v34 = vmul.f32 (!%p920_p11), 0.03125, %v726_v33 }
 0x152   : > { %v729_v35 = vmul.f32 %v728_v34, %v728_v34 }
 0x154   : > { %v731_v36 = vrot.slane %v729_v35, 7 }
 0x156   : > { %v733_v37 = vsub.f32 %v728_v34, %v731_v36 }
 0x158   : > { %v734_v38 = vadd.f32 1e-05, %v733_v37 }
 0x15a   : > { %1124 = vrsqrt.f32 %v734_v38 }
 0x164   : > { %v1125_v41 = vpop.eup %1124 }
 0x165   : > { %v737_v43 = vrot.slane %v1125_v41, 1 }
 0x167   : > { %v739_v46 = vmul.f32 %v737_v43, %v727_v42 }
 0x169   : > { %v740_v47 = vmul.f32 %v739_v46, %v728_v34  ;;  %v748_v48 = vrot.slane %v739_v46, %v747_v44  ;;  %v760_v49 = vrot.slane %v739_v46, %v759_v45 }
 0x16b   : > { %v742_v51 = vrot.slane %v740_v47, 7  ;;  %v749_v56 = vmul.f32 %v1388_v53, %v748_v48  ;;  %v761_v59 = vmul.f32 %v760_v49, %v1386_v50  ;;  %v750_v60 = vmul.f32 %v1392_v58, %v748_v48 }
 0x16c   : > { %v762_v61 = vmul.f32 %v760_v49, %v1390_v55 }
 0x16d   : > { %v744_v57 = vsub.f32 %v727_v42, %v742_v51 }
 0x16f   : > { %v754_v62 = vrot.slane %v744_v57, %v753_v52  ;;  %v766_v63 = vrot.slane %v744_v57, %v765_v54 }
 0x171   : > { %v755_v0 = vadd.f32 %v754_v62, %v749_v56  ;;  %v767_v1 = vadd.f32 %v766_v63, %v761_v59  ;;  %v756_v2 = vadd.f32 %v754_v62, %v750_v60  ;;  %v768_v3 = vadd.f32 %v766_v63, %v762_v61 }
 0x173   : > { %v769_v4 = vadd.f32 %v767_v1, %v755_v0  ;;  %v770_v5 = vadd.f32 %v768_v3, %v756_v2 }
 0x175   : > { %v771_v6 = vmax.f32 %v769_v4, 0.0  ;;  %v772_v7 = vmax.f32 %v770_v5, 0.0 }
 0x177   : > { %773 = vst [vmem:[%s1236_s30] sm:$0xff] %v771_v6  ;;  %774 = vst [vmem:[%s1236_s30 + $0x8] sm:$0xff] %v772_v7 }
 0x178 PF: > { %s14_s19 = sadd.s32 1, %s1164_s19   ;;  %s1437_s15 = smov %s1156_s17 }
 0x179   : > { %p11_p12 = scmp.ge.s32.totalorder %s14_s19, 6   ;;  %s1438_s16 = smov %s1160_s18 }
 0x17a   : > { %s1439_s17 = smov %s1442_s20  ;;  %s1440_s18 = smov %s1446_s21 }
 0x17b   :  { %13 = sbr.rel (!%p11_p12) target bundleno = 3 (0x3), region = 80 }

</bundles_post_ra>
